<compile_context>
chip_gen: v7x
topology: tpu7x:2x2x1
jax: 0.10.0
libtpu: 0.0.40
codegen_flags: <defaults>
</compile_context>

<pallas_src>
import math
import functools

import jax
import jax.numpy as jnp
from jax.experimental import pallas as pl
from jax.experimental.pallas import tpu as pltpu


def _round_up(a: int, b: int) -> int:
    return (a + b - 1) // b * b


def _fused_gcn_kernel(*refs, has_bias: bool):
    """Grid (j, i, k):  j = out-feature block, i = output row block,
    k = reduction block over the inner node dimension (innermost)."""
    if has_bias:
        x_ref, w_ref, adj_ref, bias_ref, o_ref, support_ref = refs
    else:
        x_ref, w_ref, adj_ref, o_ref, support_ref = refs
        bias_ref = None

    i = pl.program_id(1)
    k = pl.program_id(2)
    nk = pl.num_programs(2)

    # Phase 1: on the first row-block pass (i == 0) materialize this
    # out-feature slab of  support = x @ W  into VMEM, one k-block per step.
    # It is reused (not recomputed, never written to HBM) for all i > 0.
    @pl.when(i == 0)
    def _():
        s = jnp.dot(x_ref[...], w_ref[...], preferred_element_type=jnp.float32)
        support_ref[k] = s.astype(support_ref.dtype)

    # Phase 2: out[i, j] += adj[i, k] @ support[k, j]
    # (f32 accumulation directly in the resident output block.)
    @pl.when(k == 0)
    def _():
        o_ref[...] = jnp.zeros_like(o_ref)

    o_ref[...] += jnp.dot(adj_ref[...], support_ref[k],
                          preferred_element_type=jnp.float32)

    if has_bias:
        @pl.when(k == nk - 1)
        def _():
            o_ref[...] += bias_ref[...]          # (1, bn) broadcast over rows


@functools.partial(jax.jit, static_argnames=("block", "compute_dtype"))
def gcn_forward(x, adj, weight, bias=None, *, block=None,
                compute_dtype=jnp.bfloat16):
    """out = adj @ (x @ weight) [+ bias], fused in a single Pallas call."""
    N, Fi = x.shape
    assert adj.shape == (N, N), adj.shape
    Fi2, Fo = weight.shape
    assert Fi2 == Fi, (Fi2, Fi)
    has_bias = bias is not None
    if has_bias:
        assert bias.shape == (Fo,), bias.shape

    # ---------------- adaptive tile sizes ----------------
    if block is None:
        block = 512 if N >= 2048 else 256      # 128-wide tiles underfeed MXU/DMA
    B = min(block, _round_up(N, 128))          # row / inner-N tile (mult of 128)
    Np = _round_up(N, B)                       # padded node count
    bn = min(_round_up(Fo, 128), 256)          # out-feature tile (lane dense)
    Fop = _round_up(Fo, bn)                    # padded out_features
    nk = Np // B                               # reduction blocks

    # ------- zero-pad to tile multiples (exact: zeros contribute nothing) ----
    xp = jnp.pad(x, ((0, Np - N), (0, 0))).astype(compute_dtype)
    adjp = jnp.pad(adj, ((0, Np - N), (0, Np - N))).astype(compute_dtype)
    wp = jnp.pad(weight, ((0, 0), (0, Fop - Fo))).astype(compute_dtype)

    inputs = [xp, wp, adjp]
    in_specs = [
        # x[k_block, :]  (full in_features; cheap vs adj traffic for Fi << N)
        pl.BlockSpec((B, Fi), lambda j, i, k: (k, 0)),
        # W[:, j_block]  -- constant over (i, k): DMA'd once per j block
        pl.BlockSpec((Fi, bn), lambda j, i, k: (0, j)),
        # adj[i_block, k_block]
        pl.BlockSpec((B, B), lambda j, i, k: (i, k)),
    ]
    if has_bias:
        inputs.append(
            jnp.pad(bias.astype(jnp.float32), (0, Fop - Fo)).reshape(1, Fop))
        in_specs.append(pl.BlockSpec((1, bn), lambda j, i, k: (0, j)))

    out = pl.pallas_call(
        functools.partial(_fused_gcn_kernel, has_bias=has_bias),
        out_shape=jax.ShapeDtypeStruct((Np, Fop), jnp.float32),
        grid_spec=pltpu.PrefetchScalarGridSpec(
            num_scalar_prefetch=0,
            grid=(Fop // bn, Np // B, nk),      # (j, i, k); k = reduction, innermost
            in_specs=in_specs,
            out_specs=pl.BlockSpec((B, bn), lambda j, i, k: (i, j)),
            # support slab for the current j block, cached across all i blocks
            scratch_shapes=[pltpu.VMEM((nk, B, bn), compute_dtype)],
        ),
        compiler_params=pltpu.CompilerParams(
            # j may shard across TensorCores (slab is rebuilt per j on each core);
            # i must stay sequential (slab cached across i); k is the reduction.
            dimension_semantics=("parallel", "arbitrary", "arbitrary"),
        ),
    )(*inputs)

    return out[:N, :Fo]


class GraphConvolution:
    """JAX/Pallas port of the PyTorch GraphConvolution module (forward only)."""

    def __init__(self, in_features, out_features, bias=True, *, key):
        self.in_features = in_features
        self.out_features = out_features
        stdv = 1.0 / math.sqrt(out_features)   # same scheme as reset_parameters()
        k_w, k_b = jax.random.split(key)
        self.weight = jax.random.uniform(
            k_w, (in_features, out_features), jnp.float32, -stdv, stdv)
        self.bias = (jax.random.uniform(k_b, (out_features,), jnp.float32,
                                        -stdv, stdv) if bias else None)

    def __call__(self, x, adj):
        return gcn_forward(x, adj, self.weight, self.bias)


if __name__ == "__main__":
    key = jax.random.PRNGKey(0)
    k_param, k_x, k_adj = jax.random.split(key, 3)

    # Small demo: exercises row padding (640 -> 768), out-feature padding
    # (64 -> 128), multi-block k accumulation and the support-slab reuse.
    N, IN_F, OUT_F = 640, 128, 64

    layer = GraphConvolution(IN_F, OUT_F, bias=True, key=k_param)

    x = jax.random.normal(k_x, (N, IN_F), jnp.float32)
    # symmetric-ish row-normalized dense adjacency (~5% density + self loops)
    a_raw = (jax.random.uniform(k_adj, (N, N)) < 0.05).astype(jnp.float32)
    adj = a_raw + jnp.eye(N, dtype=jnp.float32)
    adj = adj / jnp.sum(adj, axis=1, keepdims=True)

    out = jax.block_until_ready(layer(x, adj))
    assert out.shape == (N, OUT_F), out.shape

    # correctness vs f32 reference (tolerance accounts for bf16 MXU inputs)
    ref = adj @ (x @ layer.weight) + layer.bias
    err = float(jnp.max(jnp.abs(out - ref)))
    assert err < 2e-2, f"max abs err {err}"

    # no-bias kernel variant (no zero-bias DMA / epilogue add)
    out_nb = jax.block_until_ready(gcn_forward(x, adj, layer.weight, None))
    ref_nb = adj @ (x @ layer.weight)
    err_nb = float(jnp.max(jnp.abs(out_nb - ref_nb)))
    assert err_nb < 2e-2, f"max abs err (no bias) {err_nb}"

    print("KERNEL_OK")
</pallas_src>

<mosaic_0001>
module attributes {stable_mosaic.version = 11 : i64} {
  func.func @_fused_gcn_kernel(%arg0: i32, %arg1: i32, %arg2: i32, %arg3: memref<256x128xbf16, #tpu.memory_space<vmem>>, %arg4: memref<128x128xbf16, #tpu.memory_space<vmem>>, %arg5: memref<256x256xbf16, #tpu.memory_space<vmem>>, %arg6: memref<1x128xf32, #tpu.memory_space<vmem>>, %arg7: memref<256x128xf32, #tpu.memory_space<vmem>>, %arg8: memref<3x256x128xbf16, #tpu.memory_space<vmem>>) attributes {dimension_semantics = [#tpu.dimension_semantics<parallel>, #tpu.dimension_semantics<arbitrary>, #tpu.dimension_semantics<arbitrary>], iteration_bounds = array<i64: 1, 3, 3>, scalar_prefetch = 0 : i64, scratch_operands = 1 : i64, tpu.core_type = #tpu.core_type<tc>, window_params = [{transform_indices = @transform_0, window_bounds = array<i64: 256, 128>}, {transform_indices = @transform_1, window_bounds = array<i64: 128, 128>}, {transform_indices = @transform_2, window_bounds = array<i64: 256, 256>}, {transform_indices = @transform_3, window_bounds = array<i64: 1, 128>}, {transform_indices = @transform_4, window_bounds = array<i64: 256, 128>}]} {
    %c0_i32 = arith.constant 0 : i32
    %0 = arith.cmpi eq, %arg1, %c0_i32 : i32
    %1 = arith.extui %0 : i1 to i32
    %c0_i32_0 = arith.constant 0 : i32
    %2 = arith.cmpi ne, %1, %c0_i32_0 : i32
    scf.if %2 {
      %c0_11 = arith.constant 0 : index
      %c0_12 = arith.constant 0 : index
      %17 = vector.load %arg3[%c0_11, %c0_12] : memref<256x128xbf16, #tpu.memory_space<vmem>>, vector<256x128xbf16>
      %c0_13 = arith.constant 0 : index
      %c0_14 = arith.constant 0 : index
      %18 = vector.load %arg4[%c0_13, %c0_14] : memref<128x128xbf16, #tpu.memory_space<vmem>>, vector<128x128xbf16>
      %cst_15 = arith.constant dense<0.000000e+00> : vector<256x128xf32>
      %19 = tpu.matmul %17, %18, %cst_15 {dimension_numbers = #tpu.dot_dimension_numbers<[1], [0], [0], [1], [0, 0, 1, 1], [], []>} : vector<256x128xbf16>, vector<128x128xbf16>, vector<256x128xf32> -> vector<256x128xf32>
      %20 = arith.truncf %19 : vector<256x128xf32> to vector<256x128xbf16>
      %21 = arith.index_cast %arg2 : i32 to index
      %c0_16 = arith.constant 0 : index
      %c0_17 = arith.constant 0 : index
      %22 = vector.load %arg8[%21, %c0_16, %c0_17] : memref<3x256x128xbf16, #tpu.memory_space<vmem>>, vector<1x256x128xbf16>
      %23 = vector.shape_cast %22 : vector<1x256x128xbf16> to vector<256x128xbf16>
      %24 = vector.shape_cast %20 : vector<256x128xbf16> to vector<1x256x128xbf16>
      tpu.vector_store %arg8[%21, %c0_16, %c0_17], %24 {strides = array<i32>} : memref<3x256x128xbf16, #tpu.memory_space<vmem>>, vector<1x256x128xbf16>,
    } else {
    }
    %c0_i32_1 = arith.constant 0 : i32
    %3 = arith.cmpi eq, %arg2, %c0_i32_1 : i32
    %4 = arith.extui %3 : i1 to i32
    %c0_i32_2 = arith.constant 0 : i32
    %5 = arith.cmpi ne, %4, %c0_i32_2 : i32
    scf.if %5 {
      %cst_11 = arith.constant 0.000000e+00 : f32
      %17 = vector.broadcast %cst_11 : f32 to vector<256x128xf32>
      %c0_12 = arith.constant 0 : index
      %c0_13 = arith.constant 0 : index
      %18 = vector.load %arg7[%c0_12, %c0_13] : memref<256x128xf32, #tpu.memory_space<vmem>>, vector<256x128xf32>
      tpu.vector_store %arg7[%c0_12, %c0_13], %17 {strides = array<i32>} : memref<256x128xf32, #tpu.memory_space<vmem>>, vector<256x128xf32>,
    } else {
    }
    %c0 = arith.constant 0 : index
    %c0_3 = arith.constant 0 : index
    %6 = vector.load %arg7[%c0, %c0_3] : memref<256x128xf32, #tpu.memory_space<vmem>>, vector<256x128xf32>
    %c0_4 = arith.constant 0 : index
    %c0_5 = arith.constant 0 : index
    %7 = vector.load %arg5[%c0_4, %c0_5] : memref<256x256xbf16, #tpu.memory_space<vmem>>, vector<256x256xbf16>
    %8 = arith.index_cast %arg2 : i32 to index
    %c0_6 = arith.constant 0 : index
    %c0_7 = arith.constant 0 : index
    %9 = vector.load %arg8[%8, %c0_6, %c0_7] : memref<3x256x128xbf16, #tpu.memory_space<vmem>>, vector<1x256x128xbf16>
    %10 = vector.shape_cast %9 : vector<1x256x128xbf16> to vector<256x128xbf16>
    %cst = arith.constant dense<0.000000e+00> : vector<256x128xf32>
    %11 = tpu.matmul %7, %10, %cst {dimension_numbers = #tpu.dot_dimension_numbers<[1], [0], [0], [1], [0, 0, 1, 1], [], []>} : vector<256x256xbf16>, vector<256x128xbf16>, vector<256x128xf32> -> vector<256x128xf32>
    %12 = arith.addf %6, %11 : vector<256x128xf32>
    %c0_8 = arith.constant 0 : index
    %c0_9 = arith.constant 0 : index
    %13 = vector.load %arg7[%c0_8, %c0_9] : memref<256x128xf32, #tpu.memory_space<vmem>>, vector<256x128xf32>
    tpu.vector_store %arg7[%c0_8, %c0_9], %12 {strides = array<i32>} : memref<256x128xf32, #tpu.memory_space<vmem>>, vector<256x128xf32>,
    %c2_i32 = arith.constant 2 : i32
    %14 = arith.cmpi eq, %arg2, %c2_i32 : i32
    %15 = arith.extui %14 : i1 to i32
    %c0_i32_10 = arith.constant 0 : i32
    %16 = arith.cmpi ne, %15, %c0_i32_10 : i32
    scf.if %16 {
      %c0_11 = arith.constant 0 : index
      %c0_12 = arith.constant 0 : index
      %17 = vector.load %arg7[%c0_11, %c0_12] : memref<256x128xf32, #tpu.memory_space<vmem>>, vector<256x128xf32>
      %c0_13 = arith.constant 0 : index
      %c0_14 = arith.constant 0 : index
      %18 = vector.load %arg6[%c0_13, %c0_14] : memref<1x128xf32, #tpu.memory_space<vmem>>, vector<1x128xf32>
      %19 = vector.broadcast %18 : vector<1x128xf32> to vector<256x128xf32>
      %20 = arith.addf %17, %19 : vector<256x128xf32>
      %c0_15 = arith.constant 0 : index
      %c0_16 = arith.constant 0 : index
      %21 = vector.load %arg7[%c0_15, %c0_16] : memref<256x128xf32, #tpu.memory_space<vmem>>, vector<256x128xf32>
      tpu.vector_store %arg7[%c0_15, %c0_16], %20 {strides = array<i32>} : memref<256x128xf32, #tpu.memory_space<vmem>>, vector<256x128xf32>,
    } else {
    }
    return
  }
  func.func @transform_0(%arg0: i32, %arg1: i32, %arg2: i32) -> (i32, i32) {
    %c0_i32 = arith.constant 0 : i32
    %c0_i32_0 = arith.constant 0 : i32
    return %arg2, %c0_i32 : i32, i32
  }
  func.func @transform_1(%arg0: i32, %arg1: i32, %arg2: i32) -> (i32, i32) {
    %c0_i32 = arith.constant 0 : i32
    %c0_i32_0 = arith.constant 0 : i32
    return %c0_i32, %arg0 : i32, i32
  }
  func.func @transform_2(%arg0: i32, %arg1: i32, %arg2: i32) -> (i32, i32) {
    %c0_i32 = arith.constant 0 : i32
    return %arg1, %arg2 : i32, i32
  }
  func.func @transform_3(%arg0: i32, %arg1: i32, %arg2: i32) -> (i32, i32) {
    %c0_i32 = arith.constant 0 : i32
    %c0_i32_0 = arith.constant 0 : i32
    return %c0_i32, %arg0 : i32, i32
  }
  func.func @transform_4(%arg0: i32, %arg1: i32, %arg2: i32) -> (i32, i32) {
    %c0_i32 = arith.constant 0 : i32
    return %arg1, %arg0 : i32, i32
  }
}

</mosaic_0001>

<bundles_post_ra>
// kernel: gcn_forward.1
= control target key start
LH: loop header
LB: loop body
LE: loop exit
PB: predicated region body
PF: predicated region fallthrough
CT: control target
= control target key end

     0   :  { %s2095_s15 = smov 0   ;;  %s2097_s16 = smov 0   ;;  %s2571_s0 = inlined_call_operand.vmem [shape: bf16[768,128], index: 0, kind: input, shape index: {}]   ;;  %s2572_s1 = inlined_call_operand.vmem [shape: bf16[128,128], index: 1, kind: input, shape index: {}]   ;;  %s2573_s2 = inlined_call_operand.vmem [shape: bf16[768,768], index: 2, kind: input, shape index: {}]   ;;  %s2574_s3 = inlined_call_operand.vmem [shape: f32[1,128], index: 3, kind: input, shape index: {}]   ;;  %s2575_s4 = inlined_call_operand.vmem [shape: f32[768,128], index: 4, kind: output, shape index: {}]  }
   0x1   :  { %s2099_s17 = smov 0   ;;  %s2101_s18 = smov 0  }
   0x2   :  { %s2103_s19 = smov 0   ;;  %s2105_s20 = smov 0  }
   0x3   :  { %s2107_s21 = smov 0  }
   0x4 LB: > { %s26_s22 = sadd.s32 1, %s2059_s19  ;;  %s29_s23 = sadd.s32 1, %s2063_s20  ;;  %s2067_s21 = sphi %s2107_s21, %s14_s21   ;;  %s2063_s20 = sphi %s2105_s20, %s2581_s20   ;;  %s2059_s19 = sphi %s2103_s19, %s2580_s19   ;;  %s2055_s18 = sphi %s2101_s18, %s2579_s18   ;;  %s2051_s17 = sphi %s2099_s17, %s2578_s17   ;;  %s2047_s16 = sphi %s2097_s16, %s2577_s16   ;;  %s2043_s15 = sphi %s2095_s15, %s2576_s15  }
   0x5   : > { %p27_p0 = scmp.ge.s32.totalorder %s26_s22, 3  ;;  %p101_p1 = scmp.ne.s32.totalorder %s2047_s16, %s2043_s15 }
   0x6   : > { %p102_p2 = scmp.eq.s32.totalorder %s2067_s21, 0  ;;  %s94_s27 = sadd.s32 1, %s2047_s16 }
   0x7   : > { %s2583_s22 = smov (%p27_p0, %s26_s22), 0  ;;  %s2585_s23 = smov (!%p27_p0, %s29_s23), %s2063_s20 }
   0x8   : > { %p103_p3 = por %p102_p2, %p101_p1  ;;  %p31_p4 = scmp.ge.s32.totalorder %s2585_s23, 3 }
   0x9   : > { %s90_s24 = ssub.s32 %s2059_s19, %s2583_s22  ;;  %p1587_p6 = scmp.ge.s32.totalorder %s2067_s21, 9 }
   0xa   : > { %s2587_s23 = smov (%p31_p4, %s2585_s23), 0 }
   0xb   : > { %s89_s25 = ssub.s32 %s2063_s20, %s2587_s23  ;;  %194 = sbr.rel (%p1587_p6) target bundleno = 42 (0x2a), region = 24 }
   0xc   : > { %s91_s26 = sor.u32 %s90_s24, %s89_s25 }
   0xd   : > { %p92_p5 = scmp.eq.s32.totalorder %s91_s26, 0 }
   0xf   : > { %s2146_s28 = scalar_select %p92_p5, %s2047_s16, %s94_s27  }
  0x12   : > { %206 = sbr.rel (!%p103_p3) target bundleno = 42 (0x2a), region = 32  ;;  %s208_s29 = sand.u32 (%p103_p3), 1, %s2047_s16  }
  0x13   : > { %s1590_s30 = sshll.u32 (%p103_p3), %s2059_s19, 1  ;;  %s1588_s5 = sshll.u32 (%p103_p3), %s208_s29, 8 }
  0x14   : > { %s1883_s6 = smul.u32 (%p103_p3), 192, %s2063_s20  ;;  %s2160_s12 = scalar_lea.vmem (%p103_p3), [#allocation3], %s1588_s5 }
  0x16   : > { %s214_s7 = sadd.s32 (%p103_p3), %s1883_s6, %s1590_s30 }
  0x17   : > { %s1592_s8 = sshll.u32 (%p103_p3), %s214_s7, 2 }
  0x18   : > { %s2155_s11 = scalar_lea.vmem (%p103_p3), %s2573_s2, %s1592_s8 }
  0x19   : > { %v306_v0 = vld [vmem:[%s2155_s11] sm:$0xff]  ;;  %v308_v1 = vld [vmem:[%s2155_s11 + $0x18] sm:$0xff]  ;;  %v310_v2 = vld [vmem:[%s2155_s11 + $0x30] sm:$0xff] }
  0x1a   : > { %307 = vst [vmem:[%s2160_s12] sm:$0xff] %v306_v0  ;;  %309 = vst [vmem:[%s2160_s12 + $0x8] sm:$0xff] %v308_v1  ;;  %v312_v3 = vld [vmem:[%s2155_s11 + $0x48] sm:$0xff]  ;;  %v314_v4 = vld [vmem:[%s2155_s11 + $0x60] sm:$0xff] }
  0x1b   : > { %311 = vst [vmem:[%s2160_s12 + $0x10] sm:$0xff] %v310_v2  ;;  %v316_v5 = vld [vmem:[%s2155_s11 + $0x78] sm:$0xff]  ;;  %313 = vst [vmem:[%s2160_s12 + $0x18] sm:$0xff] %v312_v3  ;;  %v318_v6 = vld [vmem:[%s2155_s11 + $0x90] sm:$0xff] }
  0x1c   : > { %315 = vst [vmem:[%s2160_s12 + $0x20] sm:$0xff] %v314_v4  ;;  %317 = vst [vmem:[%s2160_s12 + $0x28] sm:$0xff] %v316_v5  ;;  %v320_v7 = vld [vmem:[%s2155_s11 + $0xa8] sm:$0xff]  ;;  %v322_v8 = vld [vmem:[%s2155_s11 + $0xc0] sm:$0xff] }
  0x1d   : > { %319 = vst [vmem:[%s2160_s12 + $0x30] sm:$0xff] %v318_v6  ;;  %321 = vst [vmem:[%s2160_s12 + $0x38] sm:$0xff] %v320_v7  ;;  %v324_v9 = vld [vmem:[%s2155_s11 + $0xd8] sm:$0xff]  ;;  %v326_v10 = vld [vmem:[%s2155_s11 + $0xf0] sm:$0xff] }
  0x1e   : > { %323 = vst [vmem:[%s2160_s12 + $0x40] sm:$0xff] %v322_v8  ;;  %v328_v11 = vld [vmem:[%s2155_s11 + $0x108] sm:$0xff]  ;;  %325 = vst [vmem:[%s2160_s12 + $0x48] sm:$0xff] %v324_v9  ;;  %v330_v12 = vld [vmem:[%s2155_s11 + $0x120] sm:$0xff] }
  0x1f   : > { %327 = vst [vmem:[%s2160_s12 + $0x50] sm:$0xff] %v326_v10  ;;  %329 = vst [vmem:[%s2160_s12 + $0x58] sm:$0xff] %v328_v11  ;;  %v332_v13 = vld [vmem:[%s2155_s11 + $0x138] sm:$0xff]  ;;  %v334_v14 = vld [vmem:[%s2155_s11 + $0x150] sm:$0xff] }
  0x20   : > { %331 = vst [vmem:[%s2160_s12 + $0x60] sm:$0xff] %v330_v12  ;;  %333 = vst [vmem:[%s2160_s12 + $0x68] sm:$0xff] %v332_v13  ;;  %v336_v15 = vld [vmem:[%s2155_s11 + $0x168] sm:$0xff]  ;;  %v338_v16 = vld [vmem:[%s2155_s11 + $0x180] sm:$0xff] }
  0x21   : > { %335 = vst [vmem:[%s2160_s12 + $0x70] sm:$0xff] %v334_v14  ;;  %v340_v17 = vld [vmem:[%s2155_s11 + $0x198] sm:$0xff]  ;;  %337 = vst [vmem:[%s2160_s12 + $0x78] sm:$0xff] %v336_v15  ;;  %v342_v18 = vld [vmem:[%s2155_s11 + $0x1b0] sm:$0xff] }
  0x22   : > { %339 = vst [vmem:[%s2160_s12 + $0x80] sm:$0xff] %v338_v16  ;;  %341 = vst [vmem:[%s2160_s12 + $0x88] sm:$0xff] %v340_v17  ;;  %v344_v19 = vld [vmem:[%s2155_s11 + $0x1c8] sm:$0xff]  ;;  %v346_v20 = vld [vmem:[%s2155_s11 + $0x1e0] sm:$0xff] }
  0x23   : > { %343 = vst [vmem:[%s2160_s12 + $0x90] sm:$0xff] %v342_v18  ;;  %345 = vst [vmem:[%s2160_s12 + $0x98] sm:$0xff] %v344_v19  ;;  %v348_v21 = vld [vmem:[%s2155_s11 + $0x1f8] sm:$0xff]  ;;  %v350_v22 = vld [vmem:[%s2155_s11 + $0x210] sm:$0xff] }
  0x24   : > { %347 = vst [vmem:[%s2160_s12 + $0xa0] sm:$0xff] %v346_v20  ;;  %v352_v23 = vld [vmem:[%s2155_s11 + $0x228] sm:$0xff]  ;;  %349 = vst [vmem:[%s2160_s12 + $0xa8] sm:$0xff] %v348_v21  ;;  %v354_v24 = vld [vmem:[%s2155_s11 + $0x240] sm:$0xff] }
  0x25   : > { %351 = vst [vmem:[%s2160_s12 + $0xb0] sm:$0xff] %v350_v22  ;;  %353 = vst [vmem:[%s2160_s12 + $0xb8] sm:$0xff] %v352_v23  ;;  %v356_v25 = vld [vmem:[%s2155_s11 + $0x258] sm:$0xff]  ;;  %v358_v26 = vld [vmem:[%s2155_s11 + $0x270] sm:$0xff] }
  0x26   : > { %355 = vst [vmem:[%s2160_s12 + $0xc0] sm:$0xff] %v354_v24  ;;  %357 = vst [vmem:[%s2160_s12 + $0xc8] sm:$0xff] %v356_v25  ;;  %v360_v27 = vld [vmem:[%s2155_s11 + $0x288] sm:$0xff]  ;;  %v362_v28 = vld [vmem:[%s2155_s11 + $0x2a0] sm:$0xff] }
  0x27   : > { %359 = vst [vmem:[%s2160_s12 + $0xd0] sm:$0xff] %v358_v26  ;;  %v364_v29 = vld [vmem:[%s2155_s11 + $0x2b8] sm:$0xff]  ;;  %361 = vst [vmem:[%s2160_s12 + $0xd8] sm:$0xff] %v360_v27  ;;  %v366_v30 = vld [vmem:[%s2155_s11 + $0x2d0] sm:$0xff] }
  0x28   : > { %363 = vst [vmem:[%s2160_s12 + $0xe0] sm:$0xff] %v362_v28  ;;  %365 = vst [vmem:[%s2160_s12 + $0xe8] sm:$0xff] %v364_v29  ;;  %v368_v31 = vld [vmem:[%s2155_s11 + $0x2e8] sm:$0xff] }
  0x29   : > { %367 = vst [vmem:[%s2160_s12 + $0xf0] sm:$0xff] %v366_v30  ;;  %369 = vst [vmem:[%s2160_s12 + $0xf8] sm:$0xff] %v368_v31 }
  0x2a PF: > { %p1593_p7 = scmp.ge.s32.totalorder %s2067_s21, 1  ;;  %p374_p8 = scmp.lt.s32.totalorder %s2067_s21, 10 }
  0x2c   : > { %p375_p9 = pnand %p1593_p7, %p374_p8 }
  0x2d   : > { %s381_s13 = sand.u32 (!%p375_p9), 1, %s2043_s15   ;;  %s1595_s14 = sshll.u32 (!%p375_p9), %s2051_s17, 5 }
  0x2e   : > { %378 = sbr.rel (%p375_p9) target bundleno = 669 (0x29d), region = 70  ;;  %s1594_s24 = sshll.u32 (!%p375_p9), %s381_s13, 8 }
  0x2f   : > { %p422_p10 = scmp.lt.s32.totalorder (!%p375_p9), %s1595_s14, 95  ;;  %s1597_s25 = sshll.u32 (!%p375_p9), %s2055_s18, 5 }
  0x30   : > { %p437_p11 = scmp.lt.s32.totalorder (!%p375_p9), %s1597_s25, 95  ;;  %s2238_s15 = scalar_lea.vmem (!%p375_p9), [#allocation3], %s1594_s24 }
  0x31   : > { %p1599_p12 = scmp.ne.s32.totalorder (!%p375_p9), %s2055_s18, 0 }
  0x35   : > { %s2589_s14 = smov (!%p422_p10, %s1595_s14), 95  ;;  %s2591_s25 = smov (!%p437_p11, %s1597_s25), 95 }
  0x36   : > { %s1596_s26 = sshll.u32 %s2589_s14, 2  ;;  %s1598_s5 = sshll.u32 %s2591_s25, 3  ;;  %v1941_v32 = vld [vmem:[%s2572_s1] sm:$0xff] (!%p1599_p12)   ;;  %v1942_v33 = vld [vmem:[%s2572_s1 + $0x8] sm:$0xff] (!%p1599_p12)   ;;  %v1943_v34 = vld [vmem:[%s2572_s1 + $0x10] sm:$0xff] (!%p1599_p12)  }
  0x37   : > { %s2231_s30 = scalar_lea.vmem %s2571_s0, %s1596_s26  ;;  %s2236_s8 = scalar_lea.vmem %s2575_s4, %s1598_s5  ;;  %1803 = vmatprep.subr.bf16.mxu0 (!%p1599_p12), %v1941_v32  ;;  %1851 = vmatprep.subr.bf16.mxu1 (!%p1599_p12), %v1941_v32  ;;  %v1944_v35 = vld [vmem:[%s2572_s1 + $0x18] sm:$0xff] (!%p1599_p12)   ;;  %v1945_v38 = vld [vmem:[%s2572_s1 + $0x20] sm:$0xff] (!%p1599_p12)   ;;  %v1946_v39 = vld [vmem:[%s2572_s1 + $0x28] sm:$0xff] (!%p1599_p12)  }
  0x38   : > { %449 = sbr.rel (%p1599_p12) target bundleno = 329 (0x149), region = 78  ;;  %1804 = vmatpush3.bf16.msra.mxu0 (!%p1599_p12), %v1941_v32  ;;  %1859 = vmatpush3.bf16.msra.mxu1 (!%p1599_p12), %v1941_v32  ;;  %v1949_v36 = vld [vmem:[%s2231_s30] sm:$0xff] (!%p1599_p12)   ;;  %v1947_v40 = vld [vmem:[%s2572_s1 + $0x30] sm:$0xff] (!%p1599_p12)   ;;  %v1948_v41 = vld [vmem:[%s2572_s1 + $0x38] sm:$0xff] (!%p1599_p12)   ;;  %s1665_s10 = sshll.u32 (!%p1599_p12), %s2051_s17, 7 }
  0x39   : > { %1805 = vmatprep.subr.bf16.mxu0 (!%p1599_p12), %v1942_v33  ;;  %1852 = vmatprep.subr.bf16.mxu1 (!%p1599_p12), %v1942_v33  ;;  %v1950_v37 = vld [vmem:[%s2231_s30 + $0x40] sm:$0xff] (!%p1599_p12)   ;;  %v1951_v42 = vld [vmem:[%s2231_s30 + $0x8] sm:$0xff] (!%p1599_p12)   ;;  %v1953_v44 = vld [vmem:[%s2231_s30 + $0x10] sm:$0xff] (!%p1599_p12)   ;;  %s2282_s11 = scalar_lea.vmem (!%p1599_p12), [#allocation2], %s1665_s10 }
  0x3a   : > { %1819 = vmatprep.mubr.bf16.mxu0 (!%p1599_p12), %v1949_v36  ;;  %1835 = vmatprep.mubr.bf16.mxu1 (!%p1599_p12), %v1950_v37  ;;  %v1952_v43 = vld [vmem:[%s2231_s30 + $0x48] sm:$0xff] (!%p1599_p12)   ;;  %v1954_v45 = vld [vmem:[%s2231_s30 + $0x50] sm:$0xff] (!%p1599_p12)   ;;  %v1955_v46 = vld [vmem:[%s2231_s30 + $0x18] sm:$0xff] (!%p1599_p12)  }
  0x3b   : > { %v1956_v47 = vld [vmem:[%s2231_s30 + $0x58] sm:$0xff] (!%p1599_p12)   ;;  %v1957_v48 = vld [vmem:[%s2231_s30 + $0x20] sm:$0xff] (!%p1599_p12)   ;;  %v1959_v50 = vld [vmem:[%s2231_s30 + $0x28] sm:$0xff] (!%p1599_p12)  }
  0x3c   : > { %1806 = vmatpush3.bf16.msra.mxu0 (!%p1599_p12), %v1942_v33  ;;  %1860 = vmatpush3.bf16.msra.mxu1 (!%p1599_p12), %v1942_v33  ;;  %v1958_v49 = vld [vmem:[%s2231_s30 + $0x60] sm:$0xff] (!%p1599_p12)   ;;  %v1960_v51 = vld [vmem:[%s2231_s30 + $0x68] sm:$0xff] (!%p1599_p12)   ;;  %v1961_v52 = vld [vmem:[%s2231_s30 + $0x30] sm:$0xff] (!%p1599_p12)  }
  0x3d   : > { %1807 = vmatprep.subr.bf16.mxu0 (!%p1599_p12), %v1943_v34  ;;  %1853 = vmatprep.subr.bf16.mxu1 (!%p1599_p12), %v1943_v34  ;;  %v1962_v53 = vld [vmem:[%s2231_s30 + $0x70] sm:$0xff] (!%p1599_p12)   ;;  %v1963_v54 = vld [vmem:[%s2231_s30 + $0x38] sm:$0xff] (!%p1599_p12)  }
  0x3e   : > { %v1964_v55 = vld [vmem:[%s2231_s30 + $0x78] sm:$0xff] (!%p1599_p12)  }
  0x40   : > { %1808 = vmatpush3.bf16.msra.mxu0 %v1943_v34  ;;  %1861 = vmatpush3.bf16.msra.mxu1 %v1943_v34 }
  0x41   : > { %1809 = vmatprep.subr.bf16.mxu0 %v1944_v35  ;;  %1854 = vmatprep.subr.bf16.mxu1 %v1944_v35 }
  0x44   : > { %1810 = vmatpush3.bf16.msra.mxu0 %v1944_v35  ;;  %1862 = vmatpush3.bf16.msra.mxu1 %v1944_v35 }
  0x45   : > { %1811 = vmatprep.subr.bf16.mxu0 %v1945_v38  ;;  %1855 = vmatprep.subr.bf16.mxu1 %v1945_v38 }
  0x48   : > { %1812 = vmatpush3.bf16.msra.mxu0 %v1945_v38  ;;  %1863 = vmatpush3.bf16.msra.mxu1 %v1945_v38 }
  0x49   : > { %1813 = vmatprep.subr.bf16.mxu0 %v1946_v39  ;;  %1856 = vmatprep.subr.bf16.mxu1 %v1946_v39 }
  0x4c   : > { %1814 = vmatpush3.bf16.msra.mxu0 %v1946_v39  ;;  %1864 = vmatpush3.bf16.msra.mxu1 %v1946_v39 }
  0x4d   : > { %1815 = vmatprep.subr.bf16.mxu0 %v1947_v40  ;;  %1857 = vmatprep.subr.bf16.mxu1 %v1947_v40 }
  0x50   : > { %1816 = vmatpush3.bf16.msra.mxu0 %v1947_v40  ;;  %1865 = vmatpush3.bf16.msra.mxu1 %v1947_v40 }
  0x51   : > { %1817 = vmatprep.subr.bf16.mxu0 %v1948_v41  ;;  %1858 = vmatprep.subr.bf16.mxu1 %v1948_v41 }
  0x54   : > { %1818 = vmatpush3.bf16.msra.mxu0 %v1948_v41  ;;  %1866 = vmatpush3.bf16.msra.mxu1 %v1948_v41 }
  0x57   : > { %1820 = vmatmul.mubr.bf16.vlgmr.msra.gmra.mrb[0].mxu0 %v1951_v42  ;;  %1836 = vmatmul.mubr.bf16.vlgmr.msra.gmra.mrb[0].mxu1 %v1952_v43 }
  0x58   : > { %1823 = vmatprep.mubr.bf16.mxu0 %v1953_v44  ;;  %1839 = vmatprep.mubr.bf16.mxu1 %v1954_v45 }
  0x5f   : > { %1824 = vmatmul.mubr.bf16.gmra.mrb[4].mxu0 %v1955_v46  ;;  %1840 = vmatmul.mubr.bf16.gmra.mrb[4].mxu1 %v1956_v47 }
  0x60   : > { %1827 = vmatprep.mubr.bf16.mxu0 %v1957_v48  ;;  %1843 = vmatprep.mubr.bf16.mxu1 %v1958_v49 }
  0x67   : > { %1828 = vmatmul.mubr.bf16.gmra.mrb[8].mxu0 %v1959_v50  ;;  %1844 = vmatmul.mubr.bf16.gmra.mrb[8].mxu1 %v1960_v51 }
  0x68   : > { %1831 = vmatprep.mubr.bf16.mxu0 %v1961_v52  ;;  %1847 = vmatprep.mubr.bf16.mxu1 %v1962_v53 }
  0x6f   : > { %1832 = vmatmul.mubr.bf16.gmra.mrb[12].mxu0 %v1963_v54  ;;  %1848 = vmatmul.mubr.bf16.gmra.mrb[12].mxu1 %v1964_v55 }
 0x12a   : > { %v1821_v56 = vpop.f32.mrb[0].mxu0  ;;  %v1837_v57 = vpop.f32.mrb[0].mxu1 }
 0x12b   : > { %v676_v58 = vpop.f32.mrb[1].mxu0  ;;  %v740_v59 = vpop.f32.mrb[1].mxu1 }
 0x12c   : > { %v1822_v60 = vpop.f32.mrb[2].mxu0  ;;  %v1838_v61 = vpop.f32.mrb[2].mxu1 }
 0x12d   : > { %v804_v62 = vpack.c.bf16 %v1822_v60, %v1821_v56  ;;  %v812_v63 = vpack.c.bf16 %v1838_v61, %v1837_v57  ;;  %v679_v0 = vpop.f32.mrb[3].mxu0  ;;  %v743_v1 = vpop.f32.mrb[3].mxu1 }
 0x12e   : > { %v803_v2 = vpack.c.bf16 %v679_v0, %v676_v58  ;;  %v811_v3 = vpack.c.bf16 %v743_v1, %v740_v59 }
 0x12f   : > { %823 = vst [vmem:[%s2282_s11 + $0x8] sm:$0xff] %v804_v62  ;;  %831 = vst [vmem:[%s2282_s11 + $0x48] sm:$0xff] %v812_v63 }
 0x130   : > { %822 = vst [vmem:[%s2282_s11] sm:$0xff] %v803_v2  ;;  %830 = vst [vmem:[%s2282_s11 + $0x40] sm:$0xff] %v811_v3 }
 0x132   : > { %v1825_v4 = vpop.f32.mrb[4].mxu0  ;;  %v1841_v5 = vpop.f32.mrb[4].mxu1 }
 0x133   : > { %v692_v6 = vpop.f32.mrb[5].mxu0  ;;  %v756_v7 = vpop.f32.mrb[5].mxu1 }
 0x134   : > { %v1826_v8 = vpop.f32.mrb[6].mxu0  ;;  %v1842_v9 = vpop.f32.mrb[6].mxu1 }
 0x135   : > { %v806_v10 = vpack.c.bf16 %v1826_v8, %v1825_v4  ;;  %v814_v11 = vpack.c.bf16 %v1842_v9, %v1841_v5  ;;  %v695_v12 = vpop.f32.mrb[7].mxu0  ;;  %v759_v13 = vpop.f32.mrb[7].mxu1 }
 0x136   : > { %v805_v14 = vpack.c.bf16 %v695_v12, %v692_v6  ;;  %v813_v15 = vpack.c.bf16 %v759_v13, %v756_v7 }
 0x137   : > { %825 = vst [vmem:[%s2282_s11 + $0x18] sm:$0xff] %v806_v10  ;;  %833 = vst [vmem:[%s2282_s11 + $0x58] sm:$0xff] %v814_v11 }
 0x138   : > { %824 = vst [vmem:[%s2282_s11 + $0x10] sm:$0xff] %v805_v14  ;;  %832 = vst [vmem:[%s2282_s11 + $0x50] sm:$0xff] %v813_v15 }
 0x13a   : > { %v1829_v16 = vpop.f32.mrb[8].mxu0  ;;  %v1845_v17 = vpop.f32.mrb[8].mxu1 }
 0x13b   : > { %v708_v18 = vpop.f32.mrb[9].mxu0  ;;  %v772_v19 = vpop.f32.mrb[9].mxu1 }
 0x13c   : > { %v1830_v20 = vpop.f32.mrb[10].mxu0  ;;  %v1846_v21 = vpop.f32.mrb[10].mxu1 }
 0x13d   : > { %v808_v22 = vpack.c.bf16 %v1830_v20, %v1829_v16  ;;  %v816_v23 = vpack.c.bf16 %v1846_v21, %v1845_v17  ;;  %v711_v24 = vpop.f32.mrb[11].mxu0  ;;  %v775_v25 = vpop.f32.mrb[11].mxu1 }
 0x13e   : > { %v807_v26 = vpack.c.bf16 %v711_v24, %v708_v18  ;;  %v815_v27 = vpack.c.bf16 %v775_v25, %v772_v19 }
 0x13f   : > { %827 = vst [vmem:[%s2282_s11 + $0x28] sm:$0xff] %v808_v22  ;;  %835 = vst [vmem:[%s2282_s11 + $0x68] sm:$0xff] %v816_v23 }
 0x140   : > { %826 = vst [vmem:[%s2282_s11 + $0x20] sm:$0xff] %v807_v26  ;;  %834 = vst [vmem:[%s2282_s11 + $0x60] sm:$0xff] %v815_v27 }
 0x142   : > { %v1833_v28 = vpop.f32.mrb[12].mxu0  ;;  %v1849_v29 = vpop.f32.mrb[12].mxu1 }
 0x143   : > { %v724_v30 = vpop.f32.mrb[13].mxu0  ;;  %v788_v31 = vpop.f32.mrb[13].mxu1 }
 0x144   : > { %v1834_v32 = vpop.f32.mrb[14].mxu0  ;;  %v1850_v33 = vpop.f32.mrb[14].mxu1 }
 0x145   : > { %v810_v34 = vpack.c.bf16 %v1834_v32, %v1833_v28  ;;  %v818_v35 = vpack.c.bf16 %v1850_v33, %v1849_v29  ;;  %v727_v36 = vpop.f32.mrb[15].mxu0  ;;  %v791_v37 = vpop.f32.mrb[15].mxu1 }
 0x146   : > { %v809_v38 = vpack.c.bf16 %v727_v36, %v724_v30  ;;  %v817_v39 = vpack.c.bf16 %v791_v37, %v788_v31 }
 0x147   : > { %829 = vst [vmem:[%s2282_s11 + $0x38] sm:$0xff] %v810_v34  ;;  %837 = vst [vmem:[%s2282_s11 + $0x78] sm:$0xff] %v818_v35 }
 0x148   : > { %828 = vst [vmem:[%s2282_s11 + $0x30] sm:$0xff] %v809_v38  ;;  %836 = vst [vmem:[%s2282_s11 + $0x70] sm:$0xff] %v817_v39 }
 0x149 PF: > { %p1626_p13 = scmp.ne.s32.totalorder %s2051_s17, 0 }
 0x14a   : > { %v2069_v40 = vmov (!%p1626_p13), 0.0  }
 0x14b   : > { %841 = sbr.rel (%p1626_p13) target bundleno = 347 (0x15b), region = 82  ;;  %842 = vst [vmem:[%s2236_s8] sm:$0xff] (!%p1626_p13), %v2069_v40  ;;  %843 = vst [vmem:[%s2236_s8 + $0x8] sm:$0xff] (!%p1626_p13), %v2069_v40 }
 0x14c   : > { %844 = vst [vmem:[%s2236_s8 + $0x10] sm:$0xff] (!%p1626_p13), %v2069_v40  ;;  %845 = vst [vmem:[%s2236_s8 + $0x18] sm:$0xff] (!%p1626_p13), %v2069_v40 }
 0x14d   : > { %846 = vst [vmem:[%s2236_s8 + $0x20] sm:$0xff] (!%p1626_p13), %v2069_v40  ;;  %847 = vst [vmem:[%s2236_s8 + $0x28] sm:$0xff] (!%p1626_p13), %v2069_v40 }
 0x14e   : > { %848 = vst [vmem:[%s2236_s8 + $0x30] sm:$0xff] (!%p1626_p13), %v2069_v40  ;;  %849 = vst [vmem:[%s2236_s8 + $0x38] sm:$0xff] (!%p1626_p13), %v2069_v40 }
 0x14f   : > { %850 = vst [vmem:[%s2236_s8 + $0x40] sm:$0xff] (!%p1626_p13), %v2069_v40  ;;  %851 = vst [vmem:[%s2236_s8 + $0x48] sm:$0xff] (!%p1626_p13), %v2069_v40 }
 0x150   : > { %852 = vst [vmem:[%s2236_s8 + $0x50] sm:$0xff] (!%p1626_p13), %v2069_v40  ;;  %853 = vst [vmem:[%s2236_s8 + $0x58] sm:$0xff] (!%p1626_p13), %v2069_v40 }
 0x151   : > { %854 = vst [vmem:[%s2236_s8 + $0x60] sm:$0xff] (!%p1626_p13), %v2069_v40  ;;  %855 = vst [vmem:[%s2236_s8 + $0x68] sm:$0xff] (!%p1626_p13), %v2069_v40 }
 0x152   : > { %856 = vst [vmem:[%s2236_s8 + $0x70] sm:$0xff] %v2069_v40  ;;  %857 = vst [vmem:[%s2236_s8 + $0x78] sm:$0xff] %v2069_v40 }
 0x153   : > { %858 = vst [vmem:[%s2236_s8 + $0x80] sm:$0xff] %v2069_v40  ;;  %859 = vst [vmem:[%s2236_s8 + $0x88] sm:$0xff] %v2069_v40 }
 0x154   : > { %860 = vst [vmem:[%s2236_s8 + $0x90] sm:$0xff] %v2069_v40  ;;  %861 = vst [vmem:[%s2236_s8 + $0x98] sm:$0xff] %v2069_v40 }
 0x155   : > { %862 = vst [vmem:[%s2236_s8 + $0xa0] sm:$0xff] %v2069_v40  ;;  %863 = vst [vmem:[%s2236_s8 + $0xa8] sm:$0xff] %v2069_v40 }
 0x156   : > { %864 = vst [vmem:[%s2236_s8 + $0xb0] sm:$0xff] %v2069_v40  ;;  %865 = vst [vmem:[%s2236_s8 + $0xb8] sm:$0xff] %v2069_v40 }
 0x157   : > { %866 = vst [vmem:[%s2236_s8 + $0xc0] sm:$0xff] %v2069_v40  ;;  %867 = vst [vmem:[%s2236_s8 + $0xc8] sm:$0xff] %v2069_v40 }
 0x158   : > { %868 = vst [vmem:[%s2236_s8 + $0xd0] sm:$0xff] %v2069_v40  ;;  %869 = vst [vmem:[%s2236_s8 + $0xd8] sm:$0xff] %v2069_v40 }
 0x159   : > { %870 = vst [vmem:[%s2236_s8 + $0xe0] sm:$0xff] %v2069_v40  ;;  %871 = vst [vmem:[%s2236_s8 + $0xe8] sm:$0xff] %v2069_v40 }
 0x15a   : > { %872 = vst [vmem:[%s2236_s8 + $0xf0] sm:$0xff] %v2069_v40  ;;  %873 = vst [vmem:[%s2236_s8 + $0xf8] sm:$0xff] %v2069_v40 }
 0x15b PF: > { %s1666_s30 = sshll.u32 %s2051_s17, 7  ;;  %v1967_v41 = vld [vmem:[%s2238_s15 + $0x4] ss:$8 sps:$4 sm:$0xff]   ;;  %v1965_v59 = vld [vmem:[%s2238_s15] ss:$8 sps:$4 sm:$0xff]   ;;  %p1661_p0 = scmp.ne.s32.totalorder %s2051_s17, 2 }
 0x15c   : > { %s2335_s12 = scalar_lea.vmem [#allocation2], %s1666_s30  ;;  %1149 = vmatprep.mubr.bf16.mxu0 %v1967_v41  ;;  %v1970_v47 = vld [vmem:[%s2238_s15 + $0x84] ss:$8 sps:$4 sm:$0xff]   ;;  %v1968_v60 = vld [vmem:[%s2238_s15 + $0x80] ss:$8 sps:$4 sm:$0xff]  }
 0x15d   : > { %v949_v42 = vld [vmem:[%s2335_s12 + $0x40] sm:$0xff]  ;;  %v950_v44 = vld [vmem:[%s2335_s12 + $0x48] sm:$0xff]  ;;  %v951_v46 = vld [vmem:[%s2335_s12 + $0x50] sm:$0xff]  ;;  %1213 = vmatprep.mubr.bf16.mxu1 %v1970_v47 }
 0x15e   : > { %v941_v43 = vld [vmem:[%s2335_s12] sm:$0xff]  ;;  %1691 = vmatprep.subr.bf16.mxu0 %v949_v42  ;;  %1867 = vmatprep.subr.bf16.mxu1 %v949_v42  ;;  %v942_v45 = vld [vmem:[%s2335_s12 + $0x8] sm:$0xff]  ;;  %v943_v48 = vld [vmem:[%s2335_s12 + $0x10] sm:$0xff] }
 0x15f   : > { %1692 = vmatpush3.bf16.msra.mxu0 %v941_v43  ;;  %1875 = vmatpush3.bf16.msra.mxu1 %v941_v43  ;;  %v952_v49 = vld [vmem:[%s2335_s12 + $0x58] sm:$0xff]  ;;  %v953_v51 = vld [vmem:[%s2335_s12 + $0x60] sm:$0xff]  ;;  %v954_v53 = vld [vmem:[%s2335_s12 + $0x68] sm:$0xff] }
 0x160   : > { %1693 = vmatprep.subr.bf16.mxu0 %v950_v44  ;;  %1868 = vmatprep.subr.bf16.mxu1 %v950_v44  ;;  %v944_v50 = vld [vmem:[%s2335_s12 + $0x18] sm:$0xff]  ;;  %v945_v52 = vld [vmem:[%s2335_s12 + $0x20] sm:$0xff]  ;;  %v946_v54 = vld [vmem:[%s2335_s12 + $0x28] sm:$0xff] }
 0x161   : > { %v955_v55 = vld [vmem:[%s2335_s12 + $0x70] sm:$0xff]  ;;  %v956_v57 = vld [vmem:[%s2335_s12 + $0x78] sm:$0xff]  ;;  %v1977_v1 = vld [vmem:[%s2238_s15 + $0x24] ss:$8 sps:$4 sm:$0xff]  }
 0x162   : > { %v947_v56 = vld [vmem:[%s2335_s12 + $0x30] sm:$0xff]  ;;  %v948_v58 = vld [vmem:[%s2335_s12 + $0x38] sm:$0xff]  ;;  %v1979_v2 = vld [vmem:[%s2238_s15 + $0xa4] ss:$8 sps:$4 sm:$0xff]  }
 0x163   : > { %1694 = vmatpush3.bf16.msra.mxu0 %v942_v45  ;;  %1876 = vmatpush3.bf16.msra.mxu1 %v942_v45  ;;  %v1971_v61 = vld [vmem:[%s2238_s15 + $0x14] ss:$8 sps:$4 sm:$0xff]   ;;  %v1975_v63 = vld [vmem:[%s2238_s15 + $0x10] ss:$8 sps:$4 sm:$0xff]   ;;  %v1981_v3 = vld [vmem:[%s2238_s15 + $0x20] ss:$8 sps:$4 sm:$0xff]  }
 0x164   : > { %1695 = vmatprep.subr.bf16.mxu0 %v951_v46  ;;  %1869 = vmatprep.subr.bf16.mxu1 %v951_v46  ;;  %v1973_v62 = vld [vmem:[%s2238_s15 + $0x94] ss:$8 sps:$4 sm:$0xff]   ;;  %v1976_v0 = vld [vmem:[%s2238_s15 + $0x90] ss:$8 sps:$4 sm:$0xff]   ;;  %v1982_v4 = vld [vmem:[%s2238_s15 + $0xa0] ss:$8 sps:$4 sm:$0xff]  }
 0x165   : > { %v1983_v5 = vld [vmem:[%s2238_s15 + $0x34] ss:$8 sps:$4 sm:$0xff]   ;;  %v1987_v7 = vld [vmem:[%s2238_s15 + $0x30] ss:$8 sps:$4 sm:$0xff]   ;;  %v1989_v9 = vld [vmem:[%s2238_s15 + $0x44] ss:$8 sps:$4 sm:$0xff]  }
 0x166   : > { %v1985_v6 = vld [vmem:[%s2238_s15 + $0xb4] ss:$8 sps:$4 sm:$0xff]   ;;  %v1988_v8 = vld [vmem:[%s2238_s15 + $0xb0] ss:$8 sps:$4 sm:$0xff]   ;;  %v1991_v10 = vld [vmem:[%s2238_s15 + $0xc4] ss:$8 sps:$4 sm:$0xff]  }
 0x167   : > { %1696 = vmatpush3.bf16.msra.mxu0 %v943_v48  ;;  %1877 = vmatpush3.bf16.msra.mxu1 %v943_v48  ;;  %v1993_v11 = vld [vmem:[%s2238_s15 + $0x40] ss:$8 sps:$4 sm:$0xff]   ;;  %v1995_v13 = vld [vmem:[%s2238_s15 + $0x54] ss:$8 sps:$4 sm:$0xff]   ;;  %v1999_v15 = vld [vmem:[%s2238_s15 + $0x50] ss:$8 sps:$4 sm:$0xff]  }
 0x168   : > { %1697 = vmatprep.subr.bf16.mxu0 %v952_v49  ;;  %1870 = vmatprep.subr.bf16.mxu1 %v952_v49  ;;  %v1994_v12 = vld [vmem:[%s2238_s15 + $0xc0] ss:$8 sps:$4 sm:$0xff]   ;;  %v1997_v14 = vld [vmem:[%s2238_s15 + $0xd4] ss:$8 sps:$4 sm:$0xff]   ;;  %v2000_v16 = vld [vmem:[%s2238_s15 + $0xd0] ss:$8 sps:$4 sm:$0xff]  }
 0x169   : > { %v2001_v17 = vld [vmem:[%s2238_s15 + $0x64] ss:$8 sps:$4 sm:$0xff]   ;;  %v2005_v19 = vld [vmem:[%s2238_s15 + $0x60] ss:$8 sps:$4 sm:$0xff]   ;;  %v2007_v21 = vld [vmem:[%s2238_s15 + $0x74] ss:$8 sps:$4 sm:$0xff]  }
 0x16a   : > { %v2003_v18 = vld [vmem:[%s2238_s15 + $0xe4] ss:$8 sps:$4 sm:$0xff]   ;;  %v2006_v20 = vld [vmem:[%s2238_s15 + $0xe0] ss:$8 sps:$4 sm:$0xff]   ;;  %v2009_v22 = vld [vmem:[%s2238_s15 + $0xf4] ss:$8 sps:$4 sm:$0xff]  }
 0x16b   : > { %1698 = vmatpush3.bf16.msra.mxu0 %v944_v50  ;;  %1878 = vmatpush3.bf16.msra.mxu1 %v944_v50  ;;  %v2011_v23 = vld [vmem:[%s2238_s15 + $0x70] ss:$8 sps:$4 sm:$0xff]   ;;  %v874_v27 = vld [vmem:[%s2236_s8] sm:$0xff]  ;;  %v875_v35 = vld [vmem:[%s2236_s8 + $0x8] sm:$0xff] }
 0x16c   : > { %1699 = vmatprep.subr.bf16.mxu0 %v953_v51  ;;  %1871 = vmatprep.subr.bf16.mxu1 %v953_v51  ;;  %v2012_v24 = vld [vmem:[%s2238_s15 + $0xf0] ss:$8 sps:$4 sm:$0xff]   ;;  %v890_v29 = vld [vmem:[%s2236_s8 + $0x80] sm:$0xff]  ;;  %v891_v37 = vld [vmem:[%s2236_s8 + $0x88] sm:$0xff] }
 0x16d   : > { %v876_v47 = vld [vmem:[%s2236_s8 + $0x10] sm:$0xff] }
 0x16e   : > { %v892_v49 = vld [vmem:[%s2236_s8 + $0x90] sm:$0xff] }
 0x16f   : > { %1700 = vmatpush3.bf16.msra.mxu0 %v945_v52  ;;  %1879 = vmatpush3.bf16.msra.mxu1 %v945_v52 }
 0x170   : > { %1701 = vmatprep.subr.bf16.mxu0 %v954_v53  ;;  %1872 = vmatprep.subr.bf16.mxu1 %v954_v53 }
 0x173   : > { %1702 = vmatpush3.bf16.msra.mxu0 %v946_v54  ;;  %1880 = vmatpush3.bf16.msra.mxu1 %v946_v54 }
 0x174   : > { %1703 = vmatprep.subr.bf16.mxu0 %v955_v55  ;;  %1873 = vmatprep.subr.bf16.mxu1 %v955_v55  ;;  %v877_v55 = vld [vmem:[%s2236_s8 + $0x18] sm:$0xff] }
 0x177   : > { %1704 = vmatpush3.bf16.msra.mxu0 %v947_v56  ;;  %1881 = vmatpush3.bf16.msra.mxu1 %v947_v56 }
 0x178   : > { %1705 = vmatprep.subr.bf16.mxu0 %v956_v57  ;;  %1874 = vmatprep.subr.bf16.mxu1 %v956_v57  ;;  %v893_v57 = vld [vmem:[%s2236_s8 + $0x98] sm:$0xff] }
 0x17b   : > { %1706 = vmatpush3.bf16.msra.mxu0 %v948_v58  ;;  %1882 = vmatpush3.bf16.msra.mxu1 %v948_v58 }
 0x17e   : > { %1150 = vmatmul.mubr.bf16.vlgmr.msra.gmra.mrb[0].mxu0 %v1965_v59  ;;  %1214 = vmatmul.mubr.bf16.vlgmr.msra.gmra.mrb[0].mxu1 %v1968_v60 }
 0x17f   : > { %1157 = vmatprep.mubr.bf16.mxu0 %v1971_v61  ;;  %1221 = vmatprep.mubr.bf16.mxu1 %v1973_v62 }
 0x186   : > { %1158 = vmatmul.mubr.bf16.gmra.mrb[4].mxu0 %v1975_v63  ;;  %1222 = vmatmul.mubr.bf16.gmra.mrb[4].mxu1 %v1976_v0 }
 0x187   : > { %1165 = vmatprep.mubr.bf16.mxu0 %v1977_v1  ;;  %1229 = vmatprep.mubr.bf16.mxu1 %v1979_v2 }
 0x18e   : > { %1166 = vmatmul.mubr.bf16.gmra.mrb[8].mxu0 %v1981_v3  ;;  %1230 = vmatmul.mubr.bf16.gmra.mrb[8].mxu1 %v1982_v4  ;;  %v878_v3 = vld [vmem:[%s2236_s8 + $0x20] sm:$0xff] }
 0x18f   : > { %1173 = vmatprep.mubr.bf16.mxu0 %v1983_v5  ;;  %1237 = vmatprep.mubr.bf16.mxu1 %v1985_v6  ;;  %v894_v5 = vld [vmem:[%s2236_s8 + $0xa0] sm:$0xff] }
 0x196   : > { %1174 = vmatmul.mubr.bf16.gmra.mrb[12].mxu0 %v1987_v7  ;;  %1238 = vmatmul.mubr.bf16.gmra.mrb[12].mxu1 %v1988_v8 }
 0x197   : > { %1181 = vmatprep.mubr.bf16.mxu0 %v1989_v9  ;;  %1245 = vmatprep.mubr.bf16.mxu1 %v1991_v10 }
 0x19e   : > { %1182 = vmatmul.mubr.bf16.gmra.mrb[16].mxu0 %v1993_v11  ;;  %1246 = vmatmul.mubr.bf16.gmra.mrb[16].mxu1 %v1994_v12  ;;  %v879_v11 = vld [vmem:[%s2236_s8 + $0x28] sm:$0xff] }
 0x19f   : > { %1189 = vmatprep.mubr.bf16.mxu0 %v1995_v13  ;;  %1253 = vmatprep.mubr.bf16.mxu1 %v1997_v14  ;;  %v895_v13 = vld [vmem:[%s2236_s8 + $0xa8] sm:$0xff] }
 0x1a6   : > { %1190 = vmatmul.mubr.bf16.gmra.mrb[20].mxu0 %v1999_v15  ;;  %1254 = vmatmul.mubr.bf16.gmra.mrb[20].mxu1 %v2000_v16 }
 0x1a7   : > { %1197 = vmatprep.mubr.bf16.mxu0 %v2001_v17  ;;  %1261 = vmatprep.mubr.bf16.mxu1 %v2003_v18 }
 0x1ae   : > { %1198 = vmatmul.mubr.bf16.gmra.mrb[24].mxu0 %v2005_v19  ;;  %1262 = vmatmul.mubr.bf16.gmra.mrb[24].mxu1 %v2006_v20 }
 0x1af   : > { %1205 = vmatprep.mubr.bf16.mxu0 %v2007_v21  ;;  %1269 = vmatprep.mubr.bf16.mxu1 %v2009_v22 }
 0x1b6   : > { %1206 = vmatmul.mubr.bf16.gmra.mrb[28].mxu0 %v2011_v23  ;;  %1270 = vmatmul.mubr.bf16.gmra.mrb[28].mxu1 %v2012_v24  ;;  %v880_v23 = vld [vmem:[%s2236_s8 + $0x30] sm:$0xff] }
 0x251   : > { %v1707_v25 = vpop.f32.mrb[0].mxu0  ;;  %v1755_v26 = vpop.f32.mrb[0].mxu1 }
 0x252   : > { %v1708_v28 = vpop.f32.mrb[1].mxu0  ;;  %v1756_v30 = vpop.f32.mrb[1].mxu1 }
 0x253   : > { %v1709_v31 = vadd.f32 %v1708_v28, %v1707_v25  ;;  %v1757_v32 = vadd.f32 %v1756_v30, %v1755_v26  ;;  %v1710_v33 = vpop.f32.mrb[2].mxu0  ;;  %v1758_v34 = vpop.f32.mrb[2].mxu1  ;;  %v896_v25 = vld [vmem:[%s2236_s8 + $0xb0] sm:$0xff] }
 0x254   : > { %v1711_v36 = vpop.f32.mrb[3].mxu0  ;;  %v1759_v38 = vpop.f32.mrb[3].mxu1 }
 0x255   : > { %v1278_v39 = vadd.f32 %v1709_v31, %v874_v27  ;;  %v1294_v40 = vadd.f32 %v1757_v32, %v890_v29  ;;  %v1712_v41 = vadd.f32 %v1711_v36, %v1710_v33  ;;  %v1760_v42 = vadd.f32 %v1759_v38, %v1758_v34  ;;  %v881_v31 = vld [vmem:[%s2236_s8 + $0x38] sm:$0xff] }
 0x256   : > { %v897_v33 = vld [vmem:[%s2236_s8 + $0xb8] sm:$0xff] }
 0x257   : > { %1310 = vst [vmem:[%s2236_s8] sm:$0xff] %v1278_v39  ;;  %1326 = vst [vmem:[%s2236_s8 + $0x80] sm:$0xff] %v1294_v40  ;;  %v1279_v43 = vadd.f32 %v1712_v41, %v875_v35  ;;  %v1295_v44 = vadd.f32 %v1760_v42, %v891_v37 }
 0x259   : > { %1311 = vst [vmem:[%s2236_s8 + $0x8] sm:$0xff] %v1279_v43  ;;  %1327 = vst [vmem:[%s2236_s8 + $0x88] sm:$0xff] %v1295_v44  ;;  %v1713_v45 = vpop.f32.mrb[4].mxu0  ;;  %v1761_v46 = vpop.f32.mrb[4].mxu1  ;;  %v882_v43 = vld [vmem:[%s2236_s8 + $0x40] sm:$0xff] }
 0x25a   : > { %v1714_v48 = vpop.f32.mrb[5].mxu0  ;;  %v1762_v50 = vpop.f32.mrb[5].mxu1 }
 0x25b   : > { %v1715_v51 = vadd.f32 %v1714_v48, %v1713_v45  ;;  %v1763_v52 = vadd.f32 %v1762_v50, %v1761_v46  ;;  %v1716_v53 = vpop.f32.mrb[6].mxu0  ;;  %v1764_v54 = vpop.f32.mrb[6].mxu1  ;;  %v898_v45 = vld [vmem:[%s2236_s8 + $0xc0] sm:$0xff] }
 0x25c   : > { %v1717_v56 = vpop.f32.mrb[7].mxu0  ;;  %v1765_v58 = vpop.f32.mrb[7].mxu1 }
 0x25d   : > { %v1280_v59 = vadd.f32 %v1715_v51, %v876_v47  ;;  %v1296_v60 = vadd.f32 %v1763_v52, %v892_v49  ;;  %v1718_v61 = vadd.f32 %v1717_v56, %v1716_v53  ;;  %v1766_v62 = vadd.f32 %v1765_v58, %v1764_v54  ;;  %v883_v51 = vld [vmem:[%s2236_s8 + $0x48] sm:$0xff] }
 0x25e   : > { %v899_v53 = vld [vmem:[%s2236_s8 + $0xc8] sm:$0xff] }
 0x25f   : > { %1312 = vst [vmem:[%s2236_s8 + $0x10] sm:$0xff] %v1280_v59  ;;  %1328 = vst [vmem:[%s2236_s8 + $0x90] sm:$0xff] %v1296_v60  ;;  %v1281_v63 = vadd.f32 %v1718_v61, %v877_v55  ;;  %v1297_v0 = vadd.f32 %v1766_v62, %v893_v57 }
 0x261   : > { %1313 = vst [vmem:[%s2236_s8 + $0x18] sm:$0xff] %v1281_v63  ;;  %1329 = vst [vmem:[%s2236_s8 + $0x98] sm:$0xff] %v1297_v0  ;;  %v1719_v1 = vpop.f32.mrb[8].mxu0  ;;  %v1767_v2 = vpop.f32.mrb[8].mxu1  ;;  %v884_v63 = vld [vmem:[%s2236_s8 + $0x50] sm:$0xff] }
 0x262   : > { %v1720_v4 = vpop.f32.mrb[9].mxu0  ;;  %v1768_v6 = vpop.f32.mrb[9].mxu1 }
 0x263   : > { %v1721_v7 = vadd.f32 %v1720_v4, %v1719_v1  ;;  %v1769_v8 = vadd.f32 %v1768_v6, %v1767_v2  ;;  %v1722_v9 = vpop.f32.mrb[10].mxu0  ;;  %v1770_v10 = vpop.f32.mrb[10].mxu1  ;;  %v900_v1 = vld [vmem:[%s2236_s8 + $0xd0] sm:$0xff] }
 0x264   : > { %v1723_v12 = vpop.f32.mrb[11].mxu0  ;;  %v1771_v14 = vpop.f32.mrb[11].mxu1 }
 0x265   : > { %v1282_v15 = vadd.f32 %v1721_v7, %v878_v3  ;;  %v1298_v16 = vadd.f32 %v1769_v8, %v894_v5  ;;  %v1724_v17 = vadd.f32 %v1723_v12, %v1722_v9  ;;  %v1772_v18 = vadd.f32 %v1771_v14, %v1770_v10  ;;  %v885_v7 = vld [vmem:[%s2236_s8 + $0x58] sm:$0xff] }
 0x266   : > { %v901_v9 = vld [vmem:[%s2236_s8 + $0xd8] sm:$0xff] }
 0x267   : > { %1314 = vst [vmem:[%s2236_s8 + $0x20] sm:$0xff] %v1282_v15  ;;  %1330 = vst [vmem:[%s2236_s8 + $0xa0] sm:$0xff] %v1298_v16  ;;  %v1283_v19 = vadd.f32 %v1724_v17, %v879_v11  ;;  %v1299_v20 = vadd.f32 %v1772_v18, %v895_v13 }
 0x269   : > { %1315 = vst [vmem:[%s2236_s8 + $0x28] sm:$0xff] %v1283_v19  ;;  %1331 = vst [vmem:[%s2236_s8 + $0xa8] sm:$0xff] %v1299_v20  ;;  %v1725_v21 = vpop.f32.mrb[12].mxu0  ;;  %v1773_v22 = vpop.f32.mrb[12].mxu1  ;;  %v886_v19 = vld [vmem:[%s2236_s8 + $0x60] sm:$0xff] }
 0x26a   : > { %v1726_v24 = vpop.f32.mrb[13].mxu0  ;;  %v1774_v26 = vpop.f32.mrb[13].mxu1 }
 0x26b   : > { %v1727_v27 = vadd.f32 %v1726_v24, %v1725_v21  ;;  %v1775_v28 = vadd.f32 %v1774_v26, %v1773_v22  ;;  %v1728_v29 = vpop.f32.mrb[14].mxu0  ;;  %v1776_v30 = vpop.f32.mrb[14].mxu1  ;;  %v902_v21 = vld [vmem:[%s2236_s8 + $0xe0] sm:$0xff] }
 0x26c   : > { %v1729_v32 = vpop.f32.mrb[15].mxu0  ;;  %v1777_v34 = vpop.f32.mrb[15].mxu1 }
 0x26d   : > { %v1284_v35 = vadd.f32 %v1727_v27, %v880_v23  ;;  %v1300_v36 = vadd.f32 %v1775_v28, %v896_v25  ;;  %v1730_v37 = vadd.f32 %v1729_v32, %v1728_v29  ;;  %v1778_v38 = vadd.f32 %v1777_v34, %v1776_v30  ;;  %v887_v27 = vld [vmem:[%s2236_s8 + $0x68] sm:$0xff] }
 0x26e   : > { %v903_v29 = vld [vmem:[%s2236_s8 + $0xe8] sm:$0xff] }
 0x26f   : > { %1316 = vst [vmem:[%s2236_s8 + $0x30] sm:$0xff] %v1284_v35  ;;  %1332 = vst [vmem:[%s2236_s8 + $0xb0] sm:$0xff] %v1300_v36  ;;  %v1285_v39 = vadd.f32 %v1730_v37, %v881_v31  ;;  %v1301_v40 = vadd.f32 %v1778_v38, %v897_v33 }
 0x271   : > { %1317 = vst [vmem:[%s2236_s8 + $0x38] sm:$0xff] %v1285_v39  ;;  %1333 = vst [vmem:[%s2236_s8 + $0xb8] sm:$0xff] %v1301_v40  ;;  %v1731_v41 = vpop.f32.mrb[16].mxu0  ;;  %v1779_v42 = vpop.f32.mrb[16].mxu1  ;;  %v888_v39 = vld [vmem:[%s2236_s8 + $0x70] sm:$0xff] }
 0x272   : > { %v1732_v44 = vpop.f32.mrb[17].mxu0  ;;  %v1780_v46 = vpop.f32.mrb[17].mxu1 }
 0x273   : > { %v1733_v47 = vadd.f32 %v1732_v44, %v1731_v41  ;;  %v1781_v48 = vadd.f32 %v1780_v46, %v1779_v42  ;;  %v1734_v49 = vpop.f32.mrb[18].mxu0  ;;  %v1782_v50 = vpop.f32.mrb[18].mxu1  ;;  %v904_v41 = vld [vmem:[%s2236_s8 + $0xf0] sm:$0xff] }
 0x274   : > { %v1735_v52 = vpop.f32.mrb[19].mxu0  ;;  %v1783_v54 = vpop.f32.mrb[19].mxu1 }
 0x275   : > { %v1286_v55 = vadd.f32 %v1733_v47, %v882_v43  ;;  %v1302_v56 = vadd.f32 %v1781_v48, %v898_v45  ;;  %v1736_v57 = vadd.f32 %v1735_v52, %v1734_v49  ;;  %v1784_v58 = vadd.f32 %v1783_v54, %v1782_v50  ;;  %v889_v47 = vld [vmem:[%s2236_s8 + $0x78] sm:$0xff] }
 0x276   : > { %v905_v49 = vld [vmem:[%s2236_s8 + $0xf8] sm:$0xff] }
 0x277   : > { %1318 = vst [vmem:[%s2236_s8 + $0x40] sm:$0xff] %v1286_v55  ;;  %1334 = vst [vmem:[%s2236_s8 + $0xc0] sm:$0xff] %v1302_v56  ;;  %v1287_v59 = vadd.f32 %v1736_v57, %v883_v51  ;;  %v1303_v60 = vadd.f32 %v1784_v58, %v899_v53  ;;  %v1346_v57 = vld [vmem:[%s2236_s8] sm:$0xff] (!%p1661_p0) }
 0x278   : > { %v2453_v58 = vld [vmem:[%s2574_s3] ss:$0 sm:$0xff] (!%p1661_p0) }
 0x279   : > { %1319 = vst [vmem:[%s2236_s8 + $0x48] sm:$0xff] %v1287_v59  ;;  %1335 = vst [vmem:[%s2236_s8 + $0xc8] sm:$0xff] %v1303_v60  ;;  %v1737_v61 = vpop.f32.mrb[20].mxu0  ;;  %v1785_v62 = vpop.f32.mrb[20].mxu1  ;;  %v1347_v59 = vld [vmem:[%s2236_s8 + $0x8] sm:$0xff] (!%p1661_p0)  ;;  %v1385_v60 = vadd.f32 (!%p1661_p0), %v2453_v58, %v1346_v57 }
 0x27a   : > { %v1738_v0 = vpop.f32.mrb[21].mxu0  ;;  %v1786_v2 = vpop.f32.mrb[21].mxu1 }
 0x27b   : > { %v1739_v3 = vadd.f32 %v1738_v0, %v1737_v61  ;;  %v1787_v4 = vadd.f32 %v1786_v2, %v1785_v62  ;;  %v1740_v5 = vpop.f32.mrb[22].mxu0  ;;  %v1788_v6 = vpop.f32.mrb[22].mxu1  ;;  %v1386_v61 = vadd.f32 (!%p1661_p0), %v2453_v58, %v1347_v59  ;;  %v1348_v62 = vld [vmem:[%s2236_s8 + $0x10] sm:$0xff] (!%p1661_p0)  ;;  %v1350_v0 = vld [vmem:[%s2236_s8 + $0x20] sm:$0xff] (!%p1661_p0)  ;;  %1417 = vst [vmem:[%s2236_s8] sm:$0xff] (!%p1661_p0), %v1385_v60 }
 0x27c   : > { %v1741_v8 = vpop.f32.mrb[23].mxu0  ;;  %v1789_v10 = vpop.f32.mrb[23].mxu1 }
 0x27d   : > { %v1288_v11 = vadd.f32 %v1739_v3, %v884_v63  ;;  %v1304_v12 = vadd.f32 %v1787_v4, %v900_v1  ;;  %v1742_v13 = vadd.f32 %v1741_v8, %v1740_v5  ;;  %v1790_v14 = vadd.f32 %v1789_v10, %v1788_v6  ;;  %v1349_v63 = vld [vmem:[%s2236_s8 + $0x18] sm:$0xff] (!%p1661_p0)  ;;  %v1351_v4 = vld [vmem:[%s2236_s8 + $0x28] sm:$0xff] (!%p1661_p0)  ;;  %v1352_v5 = vld [vmem:[%s2236_s8 + $0x30] sm:$0xff] (!%p1661_p0)  ;;  %1418 = vst [vmem:[%s2236_s8 + $0x8] sm:$0xff] (!%p1661_p0), %v1386_v61 }
 0x27e   : > { %v1387_v1 = vadd.f32 (!%p1661_p0), %v2453_v58, %v1348_v62  ;;  %v1388_v2 = vadd.f32 (!%p1661_p0), %v2453_v58, %v1349_v63  ;;  %v1389_v3 = vadd.f32 (!%p1661_p0), %v2453_v58, %v1350_v0  ;;  %v1353_v6 = vld [vmem:[%s2236_s8 + $0x38] sm:$0xff] (!%p1661_p0)  ;;  %v1391_v8 = vadd.f32 (!%p1661_p0), %v2453_v58, %v1352_v5  ;;  %v1354_v10 = vld [vmem:[%s2236_s8 + $0x40] sm:$0xff] (!%p1661_p0) }
 0x27f   : > { %1320 = vst [vmem:[%s2236_s8 + $0x50] sm:$0xff] %v1288_v11  ;;  %1336 = vst [vmem:[%s2236_s8 + $0xd0] sm:$0xff] %v1304_v12  ;;  %v1289_v15 = vadd.f32 %v1742_v13, %v885_v7  ;;  %v1305_v16 = vadd.f32 %v1790_v14, %v901_v9  ;;  %v1390_v7 = vadd.f32 (!%p1661_p0), %v2453_v58, %v1351_v4 }
 0x280   : > { %v1392_v9 = vadd.f32 (!%p1661_p0), %v2453_v58, %v1353_v6  ;;  %v1355_v11 = vld [vmem:[%s2236_s8 + $0x48] sm:$0xff] (!%p1661_p0)  ;;  %1419 = vst [vmem:[%s2236_s8 + $0x10] sm:$0xff] (!%p1661_p0), %v1387_v1  ;;  %1420 = vst [vmem:[%s2236_s8 + $0x18] sm:$0xff] (!%p1661_p0), %v1388_v2  ;;  %v1393_v13 = vadd.f32 (!%p1661_p0), %v2453_v58, %v1354_v10 }
 0x281   : > { %1321 = vst [vmem:[%s2236_s8 + $0x58] sm:$0xff] %v1289_v15  ;;  %1337 = vst [vmem:[%s2236_s8 + $0xd8] sm:$0xff] %v1305_v16  ;;  %v1743_v17 = vpop.f32.mrb[24].mxu0  ;;  %v1791_v18 = vpop.f32.mrb[24].mxu1  ;;  %v1394_v14 = vadd.f32 (!%p1661_p0), %v2453_v58, %v1355_v11 }
 0x282   : > { %v1744_v20 = vpop.f32.mrb[25].mxu0  ;;  %v1792_v22 = vpop.f32.mrb[25].mxu1  ;;  %1421 = vst [vmem:[%s2236_s8 + $0x20] sm:$0xff] (!%p1661_p0), %v1389_v3  ;;  %1422 = vst [vmem:[%s2236_s8 + $0x28] sm:$0xff] (!%p1661_p0), %v1390_v7 }
 0x283   : > { %v1745_v23 = vadd.f32 %v1744_v20, %v1743_v17  ;;  %v1793_v24 = vadd.f32 %v1792_v22, %v1791_v18  ;;  %v1746_v25 = vpop.f32.mrb[26].mxu0  ;;  %v1794_v26 = vpop.f32.mrb[26].mxu1  ;;  %1423 = vst [vmem:[%s2236_s8 + $0x30] sm:$0xff] (!%p1661_p0), %v1391_v8  ;;  %1424 = vst [vmem:[%s2236_s8 + $0x38] sm:$0xff] (!%p1661_p0), %v1392_v9 }
 0x284   : > { %v1747_v28 = vpop.f32.mrb[27].mxu0  ;;  %v1795_v30 = vpop.f32.mrb[27].mxu1  ;;  %1425 = vst [vmem:[%s2236_s8 + $0x40] sm:$0xff] (!%p1661_p0), %v1393_v13  ;;  %1426 = vst [vmem:[%s2236_s8 + $0x48] sm:$0xff] (!%p1661_p0), %v1394_v14 }
 0x285   : > { %v1290_v31 = vadd.f32 %v1745_v23, %v886_v19  ;;  %v1306_v32 = vadd.f32 %v1793_v24, %v902_v21  ;;  %v1748_v33 = vadd.f32 %v1747_v28, %v1746_v25  ;;  %v1796_v34 = vadd.f32 %v1795_v30, %v1794_v26  ;;  %v1362_v24 = vld [vmem:[%s2236_s8 + $0x80] sm:$0xff] (!%p1661_p0)  ;;  %v1363_v28 = vld [vmem:[%s2236_s8 + $0x88] sm:$0xff] (!%p1661_p0)  ;;  %v1365_v30 = vld [vmem:[%s2236_s8 + $0x98] sm:$0xff] (!%p1661_p0) }
 0x286   : > { %v1356_v12 = vld [vmem:[%s2236_s8 + $0x50] sm:$0xff] (!%p1661_p0) }
 0x287   : > { %1322 = vst [vmem:[%s2236_s8 + $0x60] sm:$0xff] %v1290_v31  ;;  %1338 = vst [vmem:[%s2236_s8 + $0xe0] sm:$0xff] %v1306_v32  ;;  %v1291_v35 = vadd.f32 %v1748_v33, %v887_v27  ;;  %v1307_v36 = vadd.f32 %v1796_v34, %v903_v29  ;;  %v1395_v15 = vadd.f32 (!%p1661_p0), %v2453_v58, %v1356_v12  ;;  %v1364_v29 = vld [vmem:[%s2236_s8 + $0x90] sm:$0xff] (!%p1661_p0)  ;;  %v1366_v34 = vld [vmem:[%s2236_s8 + $0xa0] sm:$0xff] (!%p1661_p0) }
 0x288   : > { %v1357_v16 = vld [vmem:[%s2236_s8 + $0x58] sm:$0xff] (!%p1661_p0)  ;;  %v1401_v27 = vadd.f32 (!%p1661_p0), %v2453_v58, %v1362_v24  ;;  %v1402_v31 = vadd.f32 (!%p1661_p0), %v2453_v58, %v1363_v28  ;;  %v1403_v32 = vadd.f32 (!%p1661_p0), %v2453_v58, %v1364_v29  ;;  %v1404_v33 = vadd.f32 (!%p1661_p0), %v2453_v58, %v1365_v30 }
 0x289   : > { %1323 = vst [vmem:[%s2236_s8 + $0x68] sm:$0xff] %v1291_v35  ;;  %1339 = vst [vmem:[%s2236_s8 + $0xe8] sm:$0xff] %v1307_v36  ;;  %v1749_v37 = vpop.f32.mrb[28].mxu0  ;;  %v1797_v38 = vpop.f32.mrb[28].mxu1  ;;  %v1396_v19 = vadd.f32 (!%p1661_p0), %v2453_v58, %v1357_v16  ;;  %v1367_v35 = vld [vmem:[%s2236_s8 + $0xa8] sm:$0xff] (!%p1661_p0)  ;;  %v1368_v36 = vld [vmem:[%s2236_s8 + $0xb0] sm:$0xff] (!%p1661_p0) }
 0x28a   : > { %v1750_v40 = vpop.f32.mrb[29].mxu0  ;;  %v1798_v42 = vpop.f32.mrb[29].mxu1  ;;  %1427 = vst [vmem:[%s2236_s8 + $0x50] sm:$0xff] (!%p1661_p0), %v1395_v15  ;;  %1433 = vst [vmem:[%s2236_s8 + $0x80] sm:$0xff] (!%p1661_p0), %v1401_v27 }
 0x28b   : > { %v1751_v43 = vadd.f32 %v1750_v40, %v1749_v37  ;;  %v1799_v44 = vadd.f32 %v1798_v42, %v1797_v38  ;;  %v1752_v45 = vpop.f32.mrb[30].mxu0  ;;  %v1800_v46 = vpop.f32.mrb[30].mxu1  ;;  %1345 = sbr.rel (%p1661_p0) target bundleno = 669 (0x29d), region = 86  ;;  %1428 = vst [vmem:[%s2236_s8 + $0x58] sm:$0xff] (!%p1661_p0), %v1396_v19  ;;  %v1405_v37 = vadd.f32 (!%p1661_p0), %v2453_v58, %v1366_v34  ;;  %v1406_v38 = vadd.f32 (!%p1661_p0), %v2453_v58, %v1367_v35  ;;  %v1369_v40 = vld [vmem:[%s2236_s8 + $0xb8] sm:$0xff] (!%p1661_p0)  ;;  %v1371_v42 = vld [vmem:[%s2236_s8 + $0xc8] sm:$0xff] (!%p1661_p0) }
 0x28c   : > { %v1753_v48 = vpop.f32.mrb[31].mxu0  ;;  %v1801_v50 = vpop.f32.mrb[31].mxu1  ;;  %1434 = vst [vmem:[%s2236_s8 + $0x88] sm:$0xff] (!%p1661_p0), %v1402_v31  ;;  %1435 = vst [vmem:[%s2236_s8 + $0x90] sm:$0xff] (!%p1661_p0), %v1403_v32 }
 0x28d   : > { %v1292_v51 = vadd.f32 %v1751_v43, %v888_v39  ;;  %v1308_v52 = vadd.f32 %v1799_v44, %v904_v41  ;;  %v1754_v53 = vadd.f32 %v1753_v48, %v1752_v45  ;;  %v1802_v54 = vadd.f32 %v1801_v50, %v1800_v46  ;;  %v1370_v41 = vld [vmem:[%s2236_s8 + $0xc0] sm:$0xff] (!%p1661_p0)  ;;  %1436 = vst [vmem:[%s2236_s8 + $0x98] sm:$0xff] (!%p1661_p0), %v1404_v33  ;;  %v1372_v46 = vld [vmem:[%s2236_s8 + $0xd0] sm:$0xff] (!%p1661_p0) }
 0x28e   : > { %v1358_v17 = vld [vmem:[%s2236_s8 + $0x60] sm:$0xff] (!%p1661_p0)  ;;  %v1407_v39 = vadd.f32 (!%p1661_p0), %v2453_v58, %v1368_v36  ;;  %v1408_v43 = vadd.f32 (!%p1661_p0), %v2453_v58, %v1369_v40  ;;  %v1409_v44 = vadd.f32 (!%p1661_p0), %v2453_v58, %v1370_v41  ;;  %v1410_v45 = vadd.f32 (!%p1661_p0), %v2453_v58, %v1371_v42  ;;  %1437 = vst [vmem:[%s2236_s8 + $0xa0] sm:$0xff] (!%p1661_p0), %v1405_v37 }
 0x28f   : > { %1324 = vst [vmem:[%s2236_s8 + $0x70] sm:$0xff] %v1292_v51  ;;  %1340 = vst [vmem:[%s2236_s8 + $0xf0] sm:$0xff] %v1308_v52  ;;  %v1293_v55 = vadd.f32 %v1754_v53, %v889_v47  ;;  %v1309_v56 = vadd.f32 %v1802_v54, %v905_v49  ;;  %v1397_v20 = vadd.f32 (!%p1661_p0), %v2453_v58, %v1358_v17  ;;  %v1373_v47 = vld [vmem:[%s2236_s8 + $0xd8] sm:$0xff] (!%p1661_p0)  ;;  %v1374_v48 = vld [vmem:[%s2236_s8 + $0xe0] sm:$0xff] (!%p1661_p0) }
 0x290   : > { %v1359_v18 = vld [vmem:[%s2236_s8 + $0x68] sm:$0xff] (!%p1661_p0)  ;;  %1438 = vst [vmem:[%s2236_s8 + $0xa8] sm:$0xff] (!%p1661_p0), %v1406_v38  ;;  %1439 = vst [vmem:[%s2236_s8 + $0xb0] sm:$0xff] (!%p1661_p0), %v1407_v39  ;;  %v1411_v49 = vadd.f32 (!%p1661_p0), %v2453_v58, %v1372_v46  ;;  %v1412_v50 = vadd.f32 (!%p1661_p0), %v2453_v58, %v1373_v47  ;;  %v1413_v51 = vadd.f32 (!%p1661_p0), %v2453_v58, %v1374_v48 }
 0x291   : > { %1325 = vst [vmem:[%s2236_s8 + $0x78] sm:$0xff] %v1293_v55  ;;  %1341 = vst [vmem:[%s2236_s8 + $0xf8] sm:$0xff] %v1309_v56  ;;  %v1398_v21 = vadd.f32 (!%p1661_p0), %v2453_v58, %v1359_v18  ;;  %v1375_v52 = vld [vmem:[%s2236_s8 + $0xe8] sm:$0xff] (!%p1661_p0) }
 0x292   : > { %1429 = vst [vmem:[%s2236_s8 + $0x60] sm:$0xff] %v1397_v20  ;;  %1440 = vst [vmem:[%s2236_s8 + $0xb8] sm:$0xff] %v1408_v43  ;;  %v1414_v55 = vadd.f32 %v2453_v58, %v1375_v52 }
 0x293   : > { %1430 = vst [vmem:[%s2236_s8 + $0x68] sm:$0xff] %v1398_v21  ;;  %1441 = vst [vmem:[%s2236_s8 + $0xc0] sm:$0xff] %v1409_v44 }
 0x294   : > { %1442 = vst [vmem:[%s2236_s8 + $0xc8] sm:$0xff] %v1410_v45  ;;  %1443 = vst [vmem:[%s2236_s8 + $0xd0] sm:$0xff] %v1411_v49 }
 0x295   : > { %1444 = vst [vmem:[%s2236_s8 + $0xd8] sm:$0xff] %v1412_v50  ;;  %1445 = vst [vmem:[%s2236_s8 + $0xe0] sm:$0xff] %v1413_v51 }
 0x296   : > { %v1360_v22 = vld [vmem:[%s2236_s8 + $0x70] sm:$0xff]  ;;  %1446 = vst [vmem:[%s2236_s8 + $0xe8] sm:$0xff] %v1414_v55 }
 0x297   : > { %v1399_v25 = vadd.f32 %v2453_v58, %v1360_v22  ;;  %v1376_v53 = vld [vmem:[%s2236_s8 + $0xf0] sm:$0xff] }
 0x298   : > { %v1361_v23 = vld [vmem:[%s2236_s8 + $0x78] sm:$0xff]  ;;  %v1415_v56 = vadd.f32 %v2453_v58, %v1376_v53 }
 0x299   : > { %v1400_v26 = vadd.f32 %v2453_v58, %v1361_v23  ;;  %1431 = vst [vmem:[%s2236_s8 + $0x70] sm:$0xff] %v1399_v25  ;;  %v1377_v54 = vld [vmem:[%s2236_s8 + $0xf8] sm:$0xff] }
 0x29a   : > { %v1416_v57 = vadd.f32 %v2453_v58, %v1377_v54  ;;  %1447 = vst [vmem:[%s2236_s8 + $0xf0] sm:$0xff] %v1415_v56 }
 0x29b   : > { %1432 = vst [vmem:[%s2236_s8 + $0x78] sm:$0xff] %v1400_v26 }
 0x29c   : > { %1448 = vst [vmem:[%s2236_s8 + $0xf8] sm:$0xff] %v1416_v57 }
 0x29d PF: > { %s14_s21 = sadd.s32 1, %s2067_s21   ;;  %s2576_s15 = smov %s2047_s16 }
 0x29e   : > { %p11_p1 = scmp.ge.s32.totalorder %s14_s21, 11   ;;  %s2577_s16 = smov %s2146_s28 }
 0x29f   : > { %s2578_s17 = smov %s2059_s19  ;;  %s2579_s18 = smov %s2063_s20 }
 0x2a0   : > { %s2580_s19 = smov %s2583_s22  ;;  %s2581_s20 = smov %s2587_s23 }
 0x2a1   :  { %13 = sbr.rel (!%p11_p1) target bundleno = 4 (0x4), region = 132 }

</bundles_post_ra>
